<compile_context>
chip_gen: v5e
topology: v5e:2x2
jax: 0.10.0
libtpu: 0.0.40
codegen_flags: <defaults>
</compile_context>

<pallas_src>
import math
import functools

import jax
import jax.numpy as jnp
from jax import lax
from jax.experimental import pallas as pl
from jax.experimental.pallas import tpu as pltpu


def _round_up(x, m):
    return ((x + m - 1) // m) * m


# -----------------------------------------------------------------------------
# Kernels
# -----------------------------------------------------------------------------
def _uhg_linear_single_kernel(x_ref, w_ref, b_ref, o_ref, *, approx):
    # nk == 1 fast path: no accumulator scratch, single output write.
    # x_ref: (tm, K); w_ref: (N_pad, K); b_ref: (1, N_pad); o_ref: (tm, N_pad)
    acc = lax.dot_general(
        x_ref[...], w_ref[...],
        dimension_numbers=(((1,), (1,)), ((), ())),   # contract K of both (no W^T copy)
        preferred_element_type=jnp.float32)
    acc = acc + b_ref[...].astype(jnp.float32)
    # project_to_uhg: divide each row by (L2 norm + 1e-8).
    sumsq = jnp.sum(acc * acc, axis=-1, keepdims=True)
    norm = jnp.sqrt(sumsq)                             # EUP
    if approx:
        inv = pl.reciprocal(norm + 1e-8, approx=True)  # EUP; eps stays on the norm
        o_ref[...] = (acc * inv).astype(o_ref.dtype)
    else:
        o_ref[...] = (acc / (norm + 1e-8)).astype(o_ref.dtype)


def _uhg_linear_ktiled_kernel(x_ref, w_ref, b_ref, o_ref, acc_ref, *,
                              tk, k_rem, approx):
    # K-tiled path (huge in_features). acc_ref: (tm, N_pad) f32 scratch,
    # resident across the K grid axis (innermost, "arbitrary").
    k = pl.program_id(1)
    nk = pl.num_programs(1)

    @pl.when(k == 0)
    def _():
        acc_ref[...] = jnp.zeros_like(acc_ref)

    x = x_ref[...]
    w = w_ref[...]
    if k_rem:  # static: tk does not divide K -> mask the tail K block in-kernel
        valid = jnp.where(k == nk - 1, k_rem, tk)
        xi = lax.broadcasted_iota(jnp.int32, x.shape, 1)
        wi = lax.broadcasted_iota(jnp.int32, w.shape, 1)
        x = jnp.where(xi < valid, x, jnp.zeros_like(x))
        w = jnp.where(wi < valid, w, jnp.zeros_like(w))

    acc_ref[...] += lax.dot_general(
        x, w, dimension_numbers=(((1,), (1,)), ((), ())),
        preferred_element_type=jnp.float32)

    @pl.when(k == nk - 1)
    def _():
        acc = acc_ref[...] + b_ref[...].astype(jnp.float32)
        sumsq = jnp.sum(acc * acc, axis=-1, keepdims=True)
        norm = jnp.sqrt(sumsq)
        if approx:
            inv = pl.reciprocal(norm + 1e-8, approx=True)
            o_ref[...] = (acc * inv).astype(o_ref.dtype)
        else:
            o_ref[...] = (acc / (norm + 1e-8)).astype(o_ref.dtype)


# -----------------------------------------------------------------------------
# Wrapper
# -----------------------------------------------------------------------------
def _vmem_capacity_bytes():
    try:
        info = pltpu.get_tpu_info()
        cap = int(getattr(info, "vmem_capacity_bytes", 0)) or 64 * 1024 * 1024
    except Exception:
        cap = 64 * 1024 * 1024   # conservative fallback: v7x per-TC VMEM
    return cap


def uhg_linear(x, weight, bias=None, *, tm=512, approx_reciprocal=True,
               cast_inputs_to_bf16=False):
    """x: (..., in_features); weight: (out_features, in_features); bias: (out_features,)|None."""
    out_features, in_features = weight.shape
    lead_shape = x.shape[:-1]
    xf = x.reshape(-1, in_features)
    M, K = xf.shape

    # ---- lane-dense output: pad N to a multiple of 128 with zero rows / zero bias ----
    N_pad = _round_up(out_features, 128)
    wp = weight                                     # stays (N, K): no transpose pass
    if N_pad != out_features:
        wp = jnp.pad(wp, ((0, N_pad - out_features), (0, 0)))
    if bias is None:
        b2 = jnp.zeros((1, N_pad), dtype=jnp.float32)
    else:
        b1 = bias if N_pad == out_features else jnp.pad(bias, (0, N_pad - out_features))
        b2 = b1.reshape(1, N_pad)

    # Opt-in bf16 inputs (f32 accumulation is kept in-kernel).
    if cast_inputs_to_bf16 and xf.dtype == jnp.float32:
        xf = xf.astype(jnp.bfloat16)
        wp = wp.astype(jnp.bfloat16)

    out_dtype = x.dtype
    x_it = xf.dtype.itemsize
    w_it = wp.dtype.itemsize
    b_it = b2.dtype.itemsize
    o_it = jnp.dtype(out_dtype).itemsize

    # ---- generation-aware VMEM budgets ----
    cap = _vmem_capacity_bytes()
    budget = (cap * 3) // 4                 # resident-set budget, headroom below physical
    scoped_default = 16 * 1024 * 1024       # most conservative scoped default (v5e)
    weight_budget = budget // 4             # so 2x-buffered weight slab <= budget // 2

    # ---- K tiling only if the resident (N_pad, K) weight slab is too big ----
    if K * N_pad * w_it <= weight_budget:
        tk, nk, k_rem = K, 1, 0
    else:
        granule = 256 if K >= 256 else 128  # 2x256^2 MXU on v6e/v7x; still fine on v5e
        tk_cap = max(granule, (weight_budget // (N_pad * w_it)) // granule * granule)
        tk = None
        cand = min(tk_cap, _round_up(K, granule))
        while cand >= granule:              # prefer a tk that divides K exactly
            if K % cand == 0:
                tk = cand
                break
            cand -= granule
        if tk is None:
            tk = tk_cap                     # partial tail K block, masked in-kernel
        nk = pl.cdiv(K, tk)
        k_rem = K % tk

    # ---- row tile: big, sublane-aligned, no wrapper-side M padding (Pallas masks tail) ----
    tm_eff = min(tm, _round_up(max(M, 1), 16))
    if M >= 128 and pl.cdiv(M, tm_eff) == 1:
        # give both v7x TensorCores work along the "parallel" M axis
        tm_eff = _round_up(pl.cdiv(M, 2), 16)

    def vmem_need(tm_, tk_, nk_):
        need = (2 * tm_ * tk_ * x_it        # double-buffered x tile
                + 2 * tk_ * N_pad * w_it    # weight tile (counted double-buffered)
                + 2 * tm_ * N_pad * o_it    # double-buffered output tile
                + 2 * N_pad * b_it)         # bias
        if nk_ > 1:
            need += tm_ * N_pad * 4         # f32 accumulator scratch
        return need + (1 << 20)             # slack for compiler-internal scratch

    while vmem_need(tm_eff, tk, nk) > budget and tm_eff > 16:
        tm_eff = max(16, _round_up(tm_eff // 2, 16))
    # TODO(synk): N is never tiled; very large out_features needs an N-tiled
    # two-pass variant (per-row sumsq accumulated across an N grid axis).

    ni = pl.cdiv(M, tm_eff)
    need = vmem_need(tm_eff, tk, nk)
    vmem_limit = None
    if need > scoped_default:
        vmem_limit = int(min(max(need * 3 // 2, need + (4 << 20)), (cap * 7) // 8))
        vmem_limit = max(vmem_limit, need)  # never cap below the actual need

    cost = pl.CostEstimate(
        flops=2 * M * K * N_pad + 4 * M * N_pad,
        transcendentals=2 * M,
        bytes_accessed=(xf.size * x_it + wp.size * w_it + b2.size * b_it
                        + M * N_pad * o_it),
    )

    if nk == 1:
        kernel = functools.partial(_uhg_linear_single_kernel,
                                   approx=approx_reciprocal)
        grid_spec = pltpu.PrefetchScalarGridSpec(
            num_scalar_prefetch=0,
            grid=(ni,),
            in_specs=[
                pl.BlockSpec((tm_eff, K), lambda i: (i, 0)),
                pl.BlockSpec((N_pad, K), lambda i: (0, 0)),
                pl.BlockSpec((1, N_pad), lambda i: (0, 0)),
            ],
            out_specs=pl.BlockSpec((tm_eff, N_pad), lambda i: (i, 0)),
        )
        dim_sem = ("parallel",)
    else:
        kernel = functools.partial(_uhg_linear_ktiled_kernel,
                                   tk=tk, k_rem=k_rem, approx=approx_reciprocal)
        grid_spec = pltpu.PrefetchScalarGridSpec(
            num_scalar_prefetch=0,
            grid=(ni, nk),
            in_specs=[
                pl.BlockSpec((tm_eff, tk), lambda i, k: (i, k)),
                pl.BlockSpec((N_pad, tk), lambda i, k: (0, k)),
                pl.BlockSpec((1, N_pad), lambda i, k: (0, 0)),
            ],
            out_specs=pl.BlockSpec((tm_eff, N_pad), lambda i, k: (i, 0)),
            scratch_shapes=[pltpu.VMEM((tm_eff, N_pad), jnp.float32)],
        )
        dim_sem = ("parallel", "arbitrary")

    out = pl.pallas_call(
        kernel,
        out_shape=jax.ShapeDtypeStruct((M, N_pad), out_dtype),
        grid_spec=grid_spec,
        compiler_params=pltpu.CompilerParams(
            dimension_semantics=dim_sem,
            vmem_limit_bytes=vmem_limit),
        cost_estimate=cost,
    )(xf, wp, b2)

    if N_pad != out_features:
        out = out[:, :out_features]
    return out.reshape(*lead_shape, out_features)


# -----------------------------------------------------------------------------
# Parameter init (matches nn.init.kaiming_uniform_(a=sqrt(5)) + fan_in bias)
# -----------------------------------------------------------------------------
def init_uhg_linear_params(key, in_features, out_features, dtype=jnp.float32):
    kw, kb = jax.random.split(key)
    # kaiming_uniform with a=sqrt(5): bound = sqrt(6 / ((1 + a^2) * fan_in)) = 1/sqrt(fan_in)
    w_bound = 1.0 / math.sqrt(in_features)
    weight = jax.random.uniform(kw, (out_features, in_features), dtype,
                                minval=-w_bound, maxval=w_bound)
    b_bound = 1.0 / math.sqrt(in_features)
    bias = jax.random.uniform(kb, (out_features,), dtype,
                              minval=-b_bound, maxval=b_bound)
    return weight, bias


def _reference(x, weight, bias):
    out = jnp.einsum("...k,nk->...n", x, weight) + bias
    norm = jnp.sqrt(jnp.sum(out * out, axis=-1, keepdims=True))
    return out / (norm + 1e-8)


if __name__ == "__main__":
    key = jax.random.PRNGKey(0)
    k_x, k_p = jax.random.split(key)

    batch, seq, in_features, out_features = 2, 8, 32, 64
    x = jax.random.normal(k_x, (batch, seq, in_features), dtype=jnp.float32)
    weight, bias = init_uhg_linear_params(k_p, in_features, out_features)

    fn = jax.jit(functools.partial(uhg_linear, tm=512))
    out = fn(x, weight, bias)
    jax.block_until_ready(out)

    ref = _reference(x, weight, bias)
    assert out.shape == (batch, seq, out_features)
    # approx EUP reciprocal in the epilogue trades ~1e-3-level relative precision
    # for throughput; outputs are unit-normalized so atol/rtol=5e-3 is ample.
    assert jnp.allclose(out, ref, atol=5e-3, rtol=5e-3), "mismatch vs reference"

    print("KERNEL_OK")
</pallas_src>

<mosaic_0001>
module attributes {stable_mosaic.version = 11 : i64} {
  func.func @_uhg_linear_single_kernel(%arg0: i32, %arg1: memref<16x32xf32, #tpu.memory_space<vmem>>, %arg2: memref<128x32xf32, #tpu.memory_space<vmem>>, %arg3: memref<1x128xf32, #tpu.memory_space<vmem>>, %arg4: memref<16x128xf32, #tpu.memory_space<vmem>>) attributes {dimension_semantics = [#tpu.dimension_semantics<parallel>], iteration_bounds = array<i64: 1>, scalar_prefetch = 0 : i64, scratch_operands = 0 : i64, tpu.core_type = #tpu.core_type<tc>, window_params = [{transform_indices = @transform_0, window_bounds = array<i64: 16, 32>}, {pipeline_mode = #tpu.pipeline_mode<synchronous>, transform_indices = @transform_1, window_bounds = array<i64: 128, 32>}, {pipeline_mode = #tpu.pipeline_mode<synchronous>, transform_indices = @transform_2, window_bounds = array<i64: 1, 128>}, {transform_indices = @transform_3, window_bounds = array<i64: 16, 128>}]} {
    %c0 = arith.constant 0 : index
    %c0_0 = arith.constant 0 : index
    %0 = vector.load %arg1[%c0, %c0_0] : memref<16x32xf32, #tpu.memory_space<vmem>>, vector<16x32xf32>
    %c0_1 = arith.constant 0 : index
    %c0_2 = arith.constant 0 : index
    %1 = vector.load %arg2[%c0_1, %c0_2] : memref<128x32xf32, #tpu.memory_space<vmem>>, vector<128x32xf32>
    %cst = arith.constant dense<0.000000e+00> : vector<16x128xf32>
    %2 = tpu.matmul %0, %1, %cst {dimension_numbers = #tpu.dot_dimension_numbers<[1], [1], [0], [0], [0, 0, 1, 0], [], []>} : vector<16x32xf32>, vector<128x32xf32>, vector<16x128xf32> -> vector<16x128xf32>
    %c0_3 = arith.constant 0 : index
    %c0_4 = arith.constant 0 : index
    %3 = vector.load %arg3[%c0_3, %c0_4] : memref<1x128xf32, #tpu.memory_space<vmem>>, vector<1x128xf32>
    %4 = vector.broadcast %3 : vector<1x128xf32> to vector<16x128xf32>
    %5 = arith.addf %2, %4 : vector<16x128xf32>
    %6 = arith.mulf %5, %5 : vector<16x128xf32>
    %cst_5 = arith.constant dense<0.000000e+00> : vector<16xf32>
    %7 = vector.multi_reduction <add>, %6, %cst_5 [1] : vector<16x128xf32> to vector<16xf32>
    %8 = vector.shape_cast %7 : vector<16xf32> to vector<16x1xf32>
    %9 = math.sqrt %8 : vector<16x1xf32>
    %cst_6 = arith.constant 9.99999993E-9 : f32
    %10 = vector.broadcast %cst_6 : f32 to vector<16x1xf32>
    %11 = arith.addf %9, %10 : vector<16x1xf32>
    %12 = tpu.reciprocal %11 {approx = true} : vector<16x1xf32> -> vector<16x1xf32>
    %13 = vector.broadcast %12 : vector<16x1xf32> to vector<16x128xf32>
    %14 = arith.mulf %5, %13 : vector<16x128xf32>
    %c0_7 = arith.constant 0 : index
    %c0_8 = arith.constant 0 : index
    %15 = vector.load %arg4[%c0_7, %c0_8] : memref<16x128xf32, #tpu.memory_space<vmem>>, vector<16x128xf32>
    tpu.vector_store %arg4[%c0_7, %c0_8], %14 {strides = array<i32>} : memref<16x128xf32, #tpu.memory_space<vmem>>, vector<16x128xf32>,
    return
  }
  func.func @transform_0(%arg0: i32) -> (i32, i32) {
    %c0_i32 = arith.constant 0 : i32
    %c0_i32_0 = arith.constant 0 : i32
    return %arg0, %c0_i32 : i32, i32
  }
  func.func @transform_1(%arg0: i32) -> (i32, i32) {
    %c0_i32 = arith.constant 0 : i32
    %c0_i32_0 = arith.constant 0 : i32
    %c0_i32_1 = arith.constant 0 : i32
    return %c0_i32, %c0_i32_0 : i32, i32
  }
  func.func @transform_2(%arg0: i32) -> (i32, i32) {
    %c0_i32 = arith.constant 0 : i32
    %c0_i32_0 = arith.constant 0 : i32
    %c0_i32_1 = arith.constant 0 : i32
    return %c0_i32, %c0_i32_0 : i32, i32
  }
  func.func @transform_3(%arg0: i32) -> (i32, i32) {
    %c0_i32 = arith.constant 0 : i32
    %c0_i32_0 = arith.constant 0 : i32
    return %arg0, %c0_i32 : i32, i32
  }
}

</mosaic_0001>

<bundles_post_ra>
// kernel: uhg_linear.1
= control target key start
LH: loop header
LB: loop body
LE: loop exit
PB: predicated region body
PF: predicated region fallthrough
CT: control target
= control target key end

     0   :  { %vm36_vm0 = vcmask 261120   ;;  %s316_s1 = inlined_call_operand.vmem [shape: f32[128,32], index: 1, kind: input, shape index: {}]   ;;  %s317_s2 = inlined_call_operand.vmem [shape: f32[1,128], index: 2, kind: input, shape index: {}]   ;;  %s318_s0 = inlined_call_operand.vmem [shape: f32[16,32], index: 0, kind: input, shape index: {}]   ;;  %s319_s3 = inlined_call_operand.vmem [shape: f32[16,128], index: 3, kind: output, shape index: {}]  }
   0x1   :  { %v31_v0 = vld [vmem:[%s316_s1 + $0x78] sm:$0xff]  ;;  %v30_v1 = vld [vmem:[%s316_s1 + $0x70] sm:$0xff]  ;;  %v29_v2 = vld [vmem:[%s316_s1 + $0x68] sm:$0xff] }
   0x2   :  { %156 = vmatpush.xpose.msk.msra.mxu0 %vm36_vm0, %v31_v0  ;;  %174 = vmatpush.xpose.msk.msra.mxu1 %vm36_vm0, %v31_v0  ;;  %v28_v3 = vld [vmem:[%s316_s1 + $0x60] sm:$0xff]  ;;  %v27_v4 = vld [vmem:[%s316_s1 + $0x58] sm:$0xff]  ;;  %v26_v5 = vld [vmem:[%s316_s1 + $0x50] sm:$0xff] }
   0x3   :  { %v25_v6 = vld [vmem:[%s316_s1 + $0x48] sm:$0xff]  ;;  %v24_v7 = vld [vmem:[%s316_s1 + $0x40] sm:$0xff]  ;;  %v23_v8 = vld [vmem:[%s316_s1 + $0x38] sm:$0xff] }
   0x4   :  { %v22_v9 = vld [vmem:[%s316_s1 + $0x30] sm:$0xff]  ;;  %v21_v10 = vld [vmem:[%s316_s1 + $0x28] sm:$0xff]  ;;  %v20_v11 = vld [vmem:[%s316_s1 + $0x20] sm:$0xff] }
   0x5   :  { %v19_v12 = vld [vmem:[%s316_s1 + $0x18] sm:$0xff]  ;;  %v18_v13 = vld [vmem:[%s316_s1 + $0x10] sm:$0xff]  ;;  %v17_v14 = vld [vmem:[%s316_s1 + $0x8] sm:$0xff] }
   0x6   :  { %157 = vmatpush.xpose.msk.msra.mxu0 %vm36_vm0, %v30_v1  ;;  %175 = vmatpush.xpose.msk.msra.mxu1 %vm36_vm0, %v30_v1  ;;  %v16_v15 = vld [vmem:[%s316_s1] sm:$0xff]  ;;  %v15_v17 = vld [vmem:[%s318_s0 + $0x8] sm:$0xff] }
   0x7   :  { %v14_v16 = vld [vmem:[%s318_s0] sm:$0xff] }
   0x8   :  { %v190_v18 = vld [vmem:[%s317_s2] ss:$0 sm:$0xff] }
   0xa   :  { %158 = vmatpush.xpose.msk.msra.mxu0 %vm36_vm0, %v29_v2  ;;  %176 = vmatpush.xpose.msk.msra.mxu1 %vm36_vm0, %v29_v2 }
   0xe   :  { %159 = vmatpush.xpose.msk.msra.mxu0 %vm36_vm0, %v28_v3  ;;  %177 = vmatpush.xpose.msk.msra.mxu1 %vm36_vm0, %v28_v3 }
  0x12   :  { %160 = vmatpush.xpose.msk.msra.mxu0 %vm36_vm0, %v27_v4  ;;  %178 = vmatpush.xpose.msk.msra.mxu1 %vm36_vm0, %v27_v4 }
  0x16   :  { %161 = vmatpush.xpose.msk.msra.mxu0 %vm36_vm0, %v26_v5  ;;  %179 = vmatpush.xpose.msk.msra.mxu1 %vm36_vm0, %v26_v5 }
  0x1a   :  { %162 = vmatpush.xpose.msk.msra.mxu0 %vm36_vm0, %v25_v6  ;;  %180 = vmatpush.xpose.msk.msra.mxu1 %vm36_vm0, %v25_v6 }
  0x1e   :  { %163 = vmatpush.xpose.msk.msra.mxu0 %vm36_vm0, %v24_v7  ;;  %181 = vmatpush.xpose.msk.msra.mxu1 %vm36_vm0, %v24_v7 }
  0x22   :  { %164 = vmatpush.xpose.msk.msra.mxu0 %vm36_vm0, %v23_v8  ;;  %182 = vmatpush.xpose.msk.msra.mxu1 %vm36_vm0, %v23_v8 }
  0x26   :  { %165 = vmatpush.xpose.msk.msra.mxu0 %vm36_vm0, %v22_v9  ;;  %183 = vmatpush.xpose.msk.msra.mxu1 %vm36_vm0, %v22_v9 }
  0x2a   :  { %166 = vmatpush.xpose.msk.msra.mxu0 %vm36_vm0, %v21_v10  ;;  %184 = vmatpush.xpose.msk.msra.mxu1 %vm36_vm0, %v21_v10 }
  0x2e   :  { %167 = vmatpush.xpose.msk.msra.mxu0 %vm36_vm0, %v20_v11  ;;  %185 = vmatpush.xpose.msk.msra.mxu1 %vm36_vm0, %v20_v11 }
  0x32   :  { %168 = vmatpush.xpose.msk.msra.mxu0 %vm36_vm0, %v19_v12  ;;  %186 = vmatpush.xpose.msk.msra.mxu1 %vm36_vm0, %v19_v12 }
  0x36   :  { %169 = vmatpush.xpose.msk.msra.mxu0 %vm36_vm0, %v18_v13  ;;  %187 = vmatpush.xpose.msk.msra.mxu1 %vm36_vm0, %v18_v13 }
  0x3a   :  { %170 = vmatpush.xpose.msk.msra.mxu0 %vm36_vm0, %v17_v14  ;;  %188 = vmatpush.xpose.msk.msra.mxu1 %vm36_vm0, %v17_v14 }
  0x3e   :  { %171 = vmatpush.xpose.msk.msra.mxu0 %vm36_vm0, %v16_v15  ;;  %189 = vmatpush.xpose.msk.msra.mxu1 %vm36_vm0, %v16_v15 }
  0x41   :  { %172 = vmatmul.msk.f32.vlgmr.msra.gmra.mxu0 %vm36_vm0, %v14_v16  ;;  %173 = vmatmul.msk.f32.vlgmr.msra.gmra.mxu1 %vm36_vm0, %v15_v17 }
  0xbe   :  { %v108_v19 = vpop.f32.mrf.mxu0  ;;  %v111_v21 = vpop.f32.mrf.mxu1 }
  0xbf   :  { %v109_v20 = vadd.f32 %v190_v18, %v108_v19  ;;  %v112_v23 = vadd.f32 %v190_v18, %v111_v21 }
  0xc1   :  { %v114_v22 = vmul.f32 %v109_v20, %v109_v20  ;;  %v115_v24 = vmul.f32 %v112_v23, %v112_v23 }
  0xc3   :  { %116 = vadd.xlane.f32.xlu0 %v114_v22 }
  0xcb   :  { %118 = vadd.xlane.f32.xlu0 %v115_v24 }
 0x136   :  { %v117_v25 = vpop.xlane.xlu0 %116 }
 0x137   :  { %191 = vrsqrt.f32 %v117_v25  ;;  %vm127_vm1 = vcmp.eq.f32.partialorder %v117_v25, inf  ;;  %v130_v37 = vand.u32 2147483648, %v117_v25  ;;  %vm129_vm2 = vcmp.eq.f32.partialorder %v117_v25, 0.0 }
 0x13d   :  { %v192_v26 = vpop.eup %191 }
 0x13e   :  { %v121_v27 = vmul.f32 %v192_v26, %v117_v25  ;;  %v119_v28 = vpop.xlane.xlu0 %118 }
 0x13f   :  { %193 = vrsqrt.f32 %v119_v28  ;;  %vm139_vm3 = vcmp.eq.f32.partialorder %v119_v28, inf  ;;  %v142_v45 = vand.u32 2147483648, %v119_v28  ;;  %vm141_vm4 = vcmp.eq.f32.partialorder %v119_v28, 0.0 }
 0x140   :  { %v122_v29 = vmul.f32 %v192_v26, %v121_v27 }
 0x142   :  { %v123_v30 = vmul.f32 0.5, %v122_v29 }
 0x144   :  { %v124_v31 = vsub.f32 1.5, %v123_v30 }
 0x145   :  { %v194_v32 = vpop.eup %193 }
 0x146   :  { %v125_v33 = vmul.f32 %v192_v26, %v124_v31  ;;  %v133_v34 = vmul.f32 %v194_v32, %v119_v28 }
 0x148   :  { %v126_v35 = vmul.f32 %v125_v33, %v117_v25  ;;  %v134_v36 = vmul.f32 %v194_v32, %v133_v34 }
 0x14a   :  { %v128_v38 = vsel %vm127_vm1, %v117_v25, %v126_v35  ;;  %v135_v39 = vmul.f32 0.5, %v134_v36 }
 0x14b   :  { %v131_v40 = vsel %vm129_vm2, %v130_v37, %v128_v38 }
 0x14c   :  { %v144_v41 = vadd.f32 1e-08, %v131_v40  ;;  %v136_v42 = vsub.f32 1.5, %v135_v39 }
 0x14e   :  { %195 = vrcp.f32 %v144_v41  ;;  %v137_v43 = vmul.f32 %v194_v32, %v136_v42 }
 0x150   :  { %v138_v44 = vmul.f32 %v137_v43, %v119_v28 }
 0x152   :  { %v140_v46 = vsel %vm139_vm3, %v119_v28, %v138_v44 }
 0x153   :  { %v143_v47 = vsel %vm141_vm4, %v142_v45, %v140_v46 }
 0x154   :  { %v196_v48 = vpop.eup %195  ;;  %v145_v49 = vadd.f32 1e-08, %v143_v47 }
 0x155   :  { %v148_v50 = vmul.f32 %v196_v48, %v109_v20 }
 0x156   :  { %197 = vrcp.f32 %v145_v49 }
 0x157   :  { %150 = vst [vmem:[%s319_s3] sm:$0xff] %v148_v50 }
 0x15c   :  { %v198_v51 = vpop.eup %197 }
 0x15d   :  { %v149_v52 = vmul.f32 %v198_v51, %v112_v23 }
 0x15f   :  { %151 = vst [vmem:[%s319_s3 + $0x8] sm:$0xff] %v149_v52 }

</bundles_post_ra>
